<compile_context>
chip_gen: v6e
topology: v6e:2x2x1
jax: 0.10.0
libtpu: 0.0.40
codegen_flags: <defaults>
</compile_context>

<pallas_src>
import math
import functools

import jax
import jax.numpy as jnp
from jax.experimental import pallas as pl
from jax.experimental.pallas import tpu as pltpu


# ----------------------------- PE table (buffer) -----------------------------

def make_pe_table(max_len, d_model):
    """Matches the PyTorch buffer: pe has shape (max_len, 1, d_model)."""
    assert d_model % 2 == 0, "d_model must be even (as in the PyTorch module)"
    position = jnp.arange(max_len, dtype=jnp.float32)[:, None]
    div_term = jnp.exp(jnp.arange(0, d_model, 2, dtype=jnp.float32)
                       * (-math.log(10000.0) / d_model))
    ang = position * div_term                       # (max_len, d_model//2)
    pe = jnp.zeros((max_len, d_model), jnp.float32)
    pe = pe.at[:, 0::2].set(jnp.sin(ang))
    pe = pe.at[:, 1::2].set(jnp.cos(ang))
    return pe[:, None, :]                           # (max_len, 1, d_model)


def _round_up(a, b):
    return (a + b - 1) // b * b


# ------------------------------ Pallas kernel --------------------------------

def _pos_enc_kernel(seed_ref, x_ref, pe_ref, o_ref, *, p, training):
    # x_ref / o_ref: (ts, B, D)   pe_ref: (ts, D)   seed_ref: SMEM (1,) int32
    ts, B, D = x_ref.shape

    # PE broadcast over batch fused in-register (never materialized in HBM).
    # For bf16 inputs the PE tile is cast once and the add stays packed bf16
    # (v6e/v7x bf16 VALU); for f32 the cast is a no-op.
    pe_t = pe_ref[...].astype(x_ref.dtype)
    v = x_ref[...] + pe_t[:, None, :]

    if training and p > 0.0:
        # Counter-based inverted dropout: hash the global element index with a
        # strong 32-bit mixer (lowbias32).  Keep iff the 24-bit hash >= p.
        # Mask depends only on (seed, element index) => identical for any
        # tiling of the sequence axis and any grid execution order.
        shape = (ts, B, D)
        base = jnp.uint32(ts) * pl.program_id(0).astype(jnp.uint32)
        row = jax.lax.broadcasted_iota(jnp.uint32, shape, 0) + base
        col = (jax.lax.broadcasted_iota(jnp.uint32, shape, 1) * jnp.uint32(D)
               + jax.lax.broadcasted_iota(jnp.uint32, shape, 2))
        idx = row * jnp.uint32(B * D) + col

        seed = seed_ref[0].astype(jnp.uint32)
        h = idx ^ (seed * jnp.uint32(0x9E3779B1))
        h = h ^ (h >> jnp.uint32(16))
        h = h * jnp.uint32(0x7FEB352D)
        h = h ^ (h >> jnp.uint32(15))
        h = h * jnp.uint32(0x846CA68B)
        h = h ^ (h >> jnp.uint32(16))

        thr = jnp.int32(int(round(p * (1 << 24))))
        keep = (h >> jnp.uint32(8)).astype(jnp.int32) >= thr   # integer compare
        scale = jnp.asarray(1.0 / (1.0 - p), v.dtype)
        v = jnp.where(keep, v * scale, jnp.zeros_like(v))      # fused scale+select

    o_ref[...] = v.astype(o_ref.dtype)


# ------------------------------ host wrapper ---------------------------------

def positional_encoding_forward(x, pe, *, p=0.1, training=False, seed=0,
                                seq_block=2048):
    """x: (seq_len, batch, d_model); pe: (max_len, 1, d_model) PyTorch buffer."""
    S, B, D = x.shape
    assert pe.ndim == 3 and pe.shape[1] == 1 and pe.shape[2] == D
    assert pe.shape[0] >= S, "sequence longer than the PE table"

    pe2 = pe.reshape(pe.shape[0], D)              # free, contiguous reshape

    itemsize = x.dtype.itemsize
    sub_q = max(8, 32 // itemsize)                # sublane quantum: 8 f32 / 16 bf16
    d_pad = _round_up(D, 128)
    b_pad = _round_up(B, sub_q)

    # Double-buffered VMEM working set per sequence row:
    #   x tile + out tile (2 buffers each, sublane-padded to b_pad) + pe tile
    #   (2 buffers, f32).  Training adds a few full-tile u32 temporaries for
    #   the dropout hash, so use a slightly smaller tile budget there.
    bytes_per_row = 2 * (2 * b_pad * d_pad * itemsize + d_pad * 4)
    budget = (8 << 20) if (training and p > 0.0) else (12 << 20)
    max_rows = max(sub_q, budget // bytes_per_row)

    ts_cap = max(sub_q, min(S, seq_block, max_rows))
    # Guarantee >= 2 grid steps whenever S allows it so the "parallel" seq axis
    # can be split across both TensorCores on v7x (neutral on v5e/v6e).
    min_tiles = 2 if S >= 2 * sub_q else 1
    n_tiles = max(min_tiles, pl.cdiv(S, ts_cap))
    ts = min(_round_up(pl.cdiv(S, n_tiles), sub_q), _round_up(S, sub_q))
    grid = (pl.cdiv(S, ts),)

    seed_arr = jnp.asarray([seed], jnp.int32)
    kernel = functools.partial(_pos_enc_kernel, p=float(p),
                               training=bool(training))

    out = pl.pallas_call(
        kernel,
        grid=grid,
        out_shape=jax.ShapeDtypeStruct((S, B, D), x.dtype),
        in_specs=[
            pl.BlockSpec(memory_space=pltpu.MemorySpace.SMEM),   # dropout seed
            pl.BlockSpec((ts, B, D), lambda i: (i, 0, 0)),       # x tile
            pl.BlockSpec((ts, D), lambda i: (i, 0)),             # pe tile
        ],
        out_specs=pl.BlockSpec((ts, B, D), lambda i: (i, 0, 0)),
        compiler_params=pltpu.CompilerParams(
            dimension_semantics=("parallel",),
            vmem_limit_bytes=32 * 1024 * 1024),
    )(seed_arr, x, pe2)
    return out


def positional_encoding_reference(x, pe):
    """Pure-JAX reference of the PyTorch forward in eval mode."""
    return x + pe[: x.shape[0]]


# ---------------------------------- main --------------------------------------

if __name__ == "__main__":
    p = 0.1
    max_len = 5000

    # Small shapes implied by the module's forward: (seq_len, batch, d_model).
    S, B, D = 8, 2, 32
    x = jax.random.normal(jax.random.PRNGKey(0), (S, B, D), jnp.float32)
    pe = make_pe_table(max_len, D)

    fwd_eval = jax.jit(functools.partial(positional_encoding_forward,
                                         p=p, training=False))
    out = fwd_eval(x, pe)
    jax.block_until_ready(out)
    ref = positional_encoding_reference(x, pe)
    assert out.shape == (S, B, D) and out.dtype == x.dtype
    assert jnp.allclose(out, ref, atol=1e-6, rtol=1e-6), \
        float(jnp.max(jnp.abs(out - ref)))

    # Larger multi-tile case: exercises the >=2-step pipelined seq grid.
    S2, B2, D2 = 1024, 4, 128
    x2 = jax.random.normal(jax.random.PRNGKey(1), (S2, B2, D2), jnp.float32)
    pe_big = make_pe_table(max_len, D2)
    out2 = fwd_eval(x2, pe_big)
    jax.block_until_ready(out2)
    ref2 = positional_encoding_reference(x2, pe_big)
    assert jnp.allclose(out2, ref2, atol=1e-6, rtol=1e-6)

    # Ragged sequence case: S not a multiple of the tile size (tail tile masked).
    S3, B3, D3 = 20, 2, 128
    x3 = jax.random.normal(jax.random.PRNGKey(2), (S3, B3, D3), jnp.float32)
    pe3 = make_pe_table(max_len, D3)
    out3 = jax.jit(functools.partial(positional_encoding_forward, p=p,
                                     training=False, seq_block=8))(x3, pe3)
    jax.block_until_ready(out3)
    assert jnp.allclose(out3, positional_encoding_reference(x3, pe3),
                        atol=1e-6, rtol=1e-6)

    # Training mode: in-kernel counter-based dropout.  Every element must be
    # either exactly 0 (dropped) or (x + pe) / (1 - p) (kept & rescaled), and
    # the drop fraction must be ~p.
    fwd_train = jax.jit(functools.partial(positional_encoding_forward,
                                          p=p, training=True, seed=1234))
    out_t = fwd_train(x2, pe_big)
    jax.block_until_ready(out_t)
    assert out_t.shape == (S2, B2, D2)
    kept_val = ref2 * jnp.float32(1.0 / (1.0 - p))
    is_zero = jnp.isclose(out_t, 0.0, atol=1e-6)
    is_kept = jnp.isclose(out_t, kept_val, atol=1e-5, rtol=1e-5)
    assert bool(jnp.all(is_zero | is_kept))
    drop_frac = float(jnp.mean((is_zero & ~is_kept).astype(jnp.float32)))
    assert 0.05 < drop_frac < 0.15, drop_frac

    # Dropout mask depends only on (seed, global element index): the result is
    # bit-identical for a different sequence tiling.
    out_t_b = jax.jit(functools.partial(positional_encoding_forward, p=p,
                                        training=True, seed=1234,
                                        seq_block=128))(x2, pe_big)
    jax.block_until_ready(out_t_b)
    assert bool(jnp.all(out_t == out_t_b))

    print("KERNEL_OK")
</pallas_src>

<mosaic_0001>
module attributes {stable_mosaic.version = 11 : i64} {
  func.func @_pos_enc_kernel(%arg0: i32, %arg1: memref<1xi32, #tpu.memory_space<smem>>, %arg2: memref<8x2x32xf32, #tpu.memory_space<vmem>>, %arg3: memref<8x32xf32, #tpu.memory_space<vmem>>, %arg4: memref<8x2x32xf32, #tpu.memory_space<vmem>>) attributes {dimension_semantics = [#tpu.dimension_semantics<parallel>], iteration_bounds = array<i64: 1>, scalar_prefetch = 0 : i64, scratch_operands = 0 : i64, tpu.core_type = #tpu.core_type<tc>, window_params = [{transform_indices = @transform_0, window_bounds = array<i64: 1>}, {transform_indices = @transform_1, window_bounds = array<i64: 8, 2, 32>}, {transform_indices = @transform_2, window_bounds = array<i64: 8, 32>}, {transform_indices = @transform_3, window_bounds = array<i64: 8, 2, 32>}]} {
    %c0 = arith.constant 0 : index
    %c0_0 = arith.constant 0 : index
    %0 = vector.load %arg3[%c0, %c0_0] : memref<8x32xf32, #tpu.memory_space<vmem>>, vector<8x32xf32>
    %c0_1 = arith.constant 0 : index
    %c0_2 = arith.constant 0 : index
    %c0_3 = arith.constant 0 : index
    %1 = vector.load %arg2[%c0_1, %c0_2, %c0_3] : memref<8x2x32xf32, #tpu.memory_space<vmem>>, vector<8x2x32xf32>
    %2 = vector.shape_cast %0 : vector<8x32xf32> to vector<8x1x32xf32>
    %3 = vector.broadcast %2 : vector<8x1x32xf32> to vector<8x2x32xf32>
    %4 = arith.addf %1, %3 : vector<8x2x32xf32>
    %c0_4 = arith.constant 0 : index
    %c0_5 = arith.constant 0 : index
    %c0_6 = arith.constant 0 : index
    %5 = vector.load %arg4[%c0_4, %c0_5, %c0_6] : memref<8x2x32xf32, #tpu.memory_space<vmem>>, vector<8x2x32xf32>
    tpu.vector_store %arg4[%c0_4, %c0_5, %c0_6], %4 {strides = array<i32>} : memref<8x2x32xf32, #tpu.memory_space<vmem>>, vector<8x2x32xf32>,
    return
  }
  func.func @transform_0(%arg0: i32) -> i32 {
    %c0_i32 = arith.constant 0 : i32
    %c0_i32_0 = arith.constant 0 : i32
    return %c0_i32 : i32
  }
  func.func @transform_1(%arg0: i32) -> (i32, i32, i32) {
    %c0_i32 = arith.constant 0 : i32
    %c0_i32_0 = arith.constant 0 : i32
    %c0_i32_1 = arith.constant 0 : i32
    return %arg0, %c0_i32, %c0_i32_0 : i32, i32, i32
  }
  func.func @transform_2(%arg0: i32) -> (i32, i32) {
    %c0_i32 = arith.constant 0 : i32
    %c0_i32_0 = arith.constant 0 : i32
    return %arg0, %c0_i32 : i32, i32
  }
  func.func @transform_3(%arg0: i32) -> (i32, i32, i32) {
    %c0_i32 = arith.constant 0 : i32
    %c0_i32_0 = arith.constant 0 : i32
    %c0_i32_1 = arith.constant 0 : i32
    return %arg0, %c0_i32, %c0_i32_0 : i32, i32, i32
  }
}

</mosaic_0001>

<bundles_post_ra>
// kernel: positional_encoding_forward.1
= control target key start
LH: loop header
LB: loop body
LE: loop exit
PB: predicated region body
PF: predicated region fallthrough
CT: control target
= control target key end

     0   :  { %v30_v1 = vlaneseq  ;;  %v174_v2 = vmov 1966171168   ;;  %s236_s0 = inlined_call_operand.<no memory space> [shape: s32[1], index: 0, kind: input, shape index: {}]   ;;  %s237_s1 = inlined_call_operand.vmem [shape: f32[8,2,32], index: 1, kind: input, shape index: {}]   ;;  %s238_s2 = inlined_call_operand.vmem [shape: f32[5000,32], index: 2, kind: input, shape index: {}]   ;;  %s239_s3 = inlined_call_operand.hbm [shape: f32[8,2,32], index: 3, kind: output, shape index: {}]  }
   0x1   :  { %v16_v0 = vld [vmem:[%s238_s2] sm:$0xff]  ;;  %v28_v3 = vunpack.c.l.s4 %v174_v2 }
   0x2   :  { %v31_v4 = vshrl.u32 %v30_v1, 7  ;;  %v26_v6 = vcombine.high %v16_v0, %v16_v0 }
   0x3   :  { %v29_v5 = vunpack.c.0.s8 %v28_v3 }
   0x4   :  { %9 = vsyncpa [#allocation4], 0  ;;  %v77_v9 = vsub.s32 0, %v31_v4  ;;  %v17_v15 = vld [vmem:[%s237_s1] sm:$0x3]  ;;  %vm123_vm0 = vcmask 254976  }
   0x5   :  { %v32_v7 = vsub.s32 %v29_v5, %v31_v4  ;;  %v21_v19 = vld [vmem:[%s237_s1 + $0x8] sm:$0x3]  ;;  %v18_v21 = vld [vmem:[%s237_s1 + $0x2] sm:$0x3]  ;;  %v19_v22 = vld [vmem:[%s237_s1 + $0x4] sm:$0x3] }
   0x6   :  { %v22_v29 = vld [vmem:[%s237_s1 + $0xa] sm:$0x3]  ;;  %v23_v30 = vld [vmem:[%s237_s1 + $0xc] sm:$0x3]  ;;  %v20_v31 = vld [vmem:[%s237_s1 + $0x6] sm:$0x3] }
   0x7   :  { %v33_v8 = vrot.slane %v16_v0, %v32_v7  ;;  %v40_v10 = vrot.slane %v26_v6, %v32_v7  ;;  %v24_v39 = vld [vmem:[%s237_s1 + $0xe] sm:$0x3]  ;;  %s175_s28 = smov [#allocation3]  }
   0x8   :  { %s137_s29 = sshll.u32 %s175_s28, 4  ;;  %s138_s29 = int_to_ptr.vmem [resolvable:$true] %s137_s29 }
   0x9   :  { %v49_v11 = vrot.slane %v33_v8, %v32_v7  ;;  %v41_v12 = vcombine.high %v33_v8, %v33_v8  ;;  %v56_v13 = vrot.slane %v40_v10, %v32_v7  ;;  %v42_v14 = vcombine.high %v40_v10, %v40_v10  ;;  %s152_s1 = scalar_lea.vmem %s138_s29, 256  ;;  %p157_p1 = scmp.lt.s32.totalorder %s138_s29, %s138_s29 }
   0xa   :  { %p153_p0 = scmp.ne.s32.totalorder %s138_s29, %s152_s1  ;;  %p158_p2 = scmp.lt.s32.totalorder %s152_s1, %s152_s1 }
   0xb   :  { %v78_v16 = vrot.slane %v49_v11, %v77_v9  ;;  %v63_v17 = vrot.slane %v41_v12, %v32_v7  ;;  %v71_v18 = vcombine.high %v49_v11, %v49_v11  ;;  %v94_v20 = vrot.slane %v56_v13, %v77_v9 }
   0xc   :  { %v70_v23 = vrot.slane %v42_v14, %v32_v7  ;;  %v72_v24 = vcombine.high %v56_v13, %v56_v13  ;;  %p159_p3 = por %p158_p2, %p157_p1 }
   0xd   :  { %v115_v25 = vadd.f32 %v78_v16, %v17_v15  ;;  %v82_v26 = vrot.slane %v63_v17, %v77_v9  ;;  %v86_v27 = vrot.slane %v71_v18, %v77_v9  ;;  %v73_v28 = vcombine.high %v63_v17, %v63_v17 }
   0xe   :  { %v119_v32 = vadd.f32 %v94_v20, %v21_v19  ;;  %v98_v33 = vrot.slane %v70_v23, %v77_v9  ;;  %v102_v34 = vrot.slane %v72_v24, %v77_v9  ;;  %v74_v35 = vcombine.high %v70_v23, %v70_v23  ;;  %p160_p4 = pnand %p159_p3, %p153_p0 }
   0xf   :  { %124 = vst.msk [vmem:[#allocation3] sm:$0x3] %vm123_vm0, %v115_v25  ;;  %v116_v36 = vadd.f32 %v82_v26, %v18_v21  ;;  %v117_v37 = vadd.f32 %v86_v27, %v19_v22  ;;  %v90_v38 = vrot.slane %v73_v28, %v77_v9 }
  0x10   :  { %128 = vst.msk [vmem:[#allocation3 + $0x8] sm:$0x3] %vm123_vm0, %v119_v32  ;;  %v120_v40 = vadd.f32 %v98_v33, %v22_v29  ;;  %v121_v41 = vadd.f32 %v102_v34, %v23_v30  ;;  %v106_v42 = vrot.slane %v74_v35, %v77_v9 }
  0x11   :  { %125 = vst.msk [vmem:[#allocation3 + $0x2] sm:$0x3] %vm123_vm0, %v116_v36  ;;  %126 = vst.msk [vmem:[#allocation3 + $0x4] sm:$0x3] %vm123_vm0, %v117_v37  ;;  %v118_v43 = vadd.f32 %v90_v38, %v20_v31 }
  0x12   :  { %129 = vst.msk [vmem:[#allocation3 + $0xa] sm:$0x3] %vm123_vm0, %v120_v40  ;;  %130 = vst.msk [vmem:[#allocation3 + $0xc] sm:$0x3] %vm123_vm0, %v121_v41  ;;  %v122_v44 = vadd.f32 %v106_v42, %v24_v39 }
  0x13   :  { %127 = vst.msk [vmem:[#allocation3 + $0x6] sm:$0x3] %vm123_vm0, %v118_v43 }
  0x14   :  { %131 = vst.msk [vmem:[#allocation3 + $0xe] sm:$0x3] %vm123_vm0, %v122_v44 }
  0x15   :  { %163 = shalt.err (!%p160_p4)
}
  0x16   :  { %s176_s30 = smov 32   ;;  %s177_s4 = smov 2  }
  0x17   :  { %143 = dma.vmem_to_hbm [thread:$0]  %s138_s29, 256, %s239_s3, [#allocation4], %s176_s30, %s176_s30, %s177_s4  }
  0x18   :  { %172 = dma.done.wait [#allocation4], 256  }
  0x19   :  { %173 = vsyncadd [#allocation4], 4294967040 }
  0x1a   :  { %147 = vsyncpa [#allocation4], 1 }

</bundles_post_ra>
